<compile_context>
chip_gen: v7x
topology: tpu7x:2x2x1
jax: 0.10.0
libtpu: 0.0.40
codegen_flags: <defaults>
</compile_context>

<pallas_src>
import functools

import jax
import jax.numpy as jnp
from jax.experimental import pallas as pl
from jax.experimental.pallas import tpu as pltpu


def conv1d_block_kernel(x_ref, w_ref, shift_ref, o_ref, *, kernel_size):
    """One batch element: valid conv over pre-padded input, fused BN shift + ReLU.

    x_ref:     (1, L_pad, C_in)   padded input, channels on lanes
    w_ref:     (K, C_in, C_out)   conv weights with BN scale pre-folded
    shift_ref: (1, C_out)         folded (conv bias + BN) shift
    o_ref:     (1, L_out, C_out)
    """
    x = x_ref[0]                                    # (L_pad, C_in)
    l_out = o_ref.shape[1]
    c_out = o_ref.shape[2]

    acc = jnp.zeros((l_out, c_out), jnp.float32)
    for k in range(kernel_size):                    # static, tiny K -> unrolled
        acc += jnp.dot(x[k:k + l_out, :], w_ref[k],
                       preferred_element_type=jnp.float32)

    y = acc + shift_ref[...]                        # per-channel shift (VPU)
    o_ref[0] = jnp.maximum(y, 0.0)                  # fused ReLU (VPU)


def conv1d_block(x_nlc, weight, bias, gamma, beta, running_mean, running_var,
                 *, padding, eps=1e-5):
    """x_nlc: (N, L, C_in). weight: (C_out, C_in, K) torch layout. Returns (N, L_out, C_out)."""
    n, length, c_in = x_nlc.shape
    c_out, _, k = weight.shape
    l_out = length + 2 * padding - k + 1
    l_pad = length + 2 * padding

    # Fold BatchNorm (eval mode) + conv bias into weight / shift.
    scale = gamma / jnp.sqrt(running_var + eps)                     # (C_out,)
    w_klc = jnp.transpose(weight, (2, 1, 0)).astype(jnp.float32)    # (K, C_in, C_out)
    w_folded = w_klc * scale[None, None, :]
    shift = ((bias - running_mean) * scale + beta).reshape(1, c_out)
    shift = shift.astype(jnp.float32)

    # Pad the spatial axis on the host so the kernel only does a "valid" conv.
    x_pad = jnp.pad(x_nlc.astype(jnp.float32),
                    ((0, 0), (padding, padding), (0, 0)))

    kernel = functools.partial(conv1d_block_kernel, kernel_size=k)
    return pl.pallas_call(
        kernel,
        out_shape=jax.ShapeDtypeStruct((n, l_out, c_out), jnp.float32),
        grid=(n,),
        in_specs=[
            pl.BlockSpec((1, l_pad, c_in), lambda b: (b, 0, 0)),
            pl.BlockSpec((k, c_in, c_out), lambda b: (0, 0, 0)),
            pl.BlockSpec((1, c_out), lambda b: (0, 0)),
        ],
        out_specs=pl.BlockSpec((1, l_out, c_out), lambda b: (b, 0, 0)),
        compiler_params=pltpu.CompilerParams(
            dimension_semantics=("parallel",)),
    )(x_pad, w_folded, shift)


def reference(x_ncl, weight, bias, gamma, beta, mean, var, *, padding, eps=1e-5):
    """Pure-JAX reference in torch layout: (N, C_in, L) -> (N, C_out, L_out)."""
    y = jax.lax.conv_general_dilated(
        x_ncl, weight, window_strides=(1,), padding=[(padding, padding)],
        dimension_numbers=('NCH', 'OIH', 'NCH'))
    y = y + bias[None, :, None]
    y = (y - mean[None, :, None]) / jnp.sqrt(var[None, :, None] + eps)
    y = y * gamma[None, :, None] + beta[None, :, None]
    return jnp.maximum(y, 0.0)


if __name__ == "__main__":
    # Small shapes implied by the module: batch=2, in_channels=4, out_channels=8,
    # spatial L=16, kernel_size=3, padding=1 (so L_out = 16).
    N, C_IN, C_OUT, L, K, PAD = 2, 4, 8, 16, 3, 1

    key = jax.random.PRNGKey(0)
    kx, kw, kb, kg, kbeta, km, kv = jax.random.split(key, 7)

    x_ncl = jax.random.normal(kx, (N, C_IN, L), dtype=jnp.float32)       # torch layout
    weight = jax.random.normal(kw, (C_OUT, C_IN, K), dtype=jnp.float32) / jnp.sqrt(C_IN * K)
    bias = jax.random.normal(kb, (C_OUT,), dtype=jnp.float32) * 0.1
    gamma = 1.0 + 0.1 * jax.random.normal(kg, (C_OUT,), dtype=jnp.float32)
    beta = 0.1 * jax.random.normal(kbeta, (C_OUT,), dtype=jnp.float32)
    running_mean = 0.1 * jax.random.normal(km, (C_OUT,), dtype=jnp.float32)
    running_var = jax.random.uniform(kv, (C_OUT,), dtype=jnp.float32,
                                     minval=0.5, maxval=1.5)

    # Kernel works in NLC (channels-last) layout.
    x_nlc = jnp.transpose(x_ncl, (0, 2, 1))
    out_nlc = conv1d_block(x_nlc, weight, bias, gamma, beta,
                           running_mean, running_var, padding=PAD)
    out_nlc = jax.block_until_ready(out_nlc)

    ref_ncl = reference(x_ncl, weight, bias, gamma, beta,
                        running_mean, running_var, padding=PAD)
    out_ncl = jnp.transpose(out_nlc, (0, 2, 1))

    assert out_ncl.shape == ref_ncl.shape == (N, C_OUT, L)
    assert jnp.allclose(out_ncl, ref_ncl, atol=1e-5, rtol=1e-5), "mismatch vs reference"

    print("KERNEL_OK")
</pallas_src>

<mosaic_0001>
module attributes {stable_mosaic.version = 11 : i64} {
  func.func @conv1d_block_kernel(%arg0: i32, %arg1: memref<1x18x4xf32, #tpu.memory_space<vmem>>, %arg2: memref<3x4x8xf32, #tpu.memory_space<vmem>>, %arg3: memref<1x8xf32, #tpu.memory_space<vmem>>, %arg4: memref<1x16x8xf32, #tpu.memory_space<vmem>>) attributes {dimension_semantics = [#tpu.dimension_semantics<parallel>], iteration_bounds = array<i64: 2>, scalar_prefetch = 0 : i64, scratch_operands = 0 : i64, tpu.core_type = #tpu.core_type<tc>, window_params = [{transform_indices = @transform_0, window_bounds = array<i64: 1, 18, 4>}, {pipeline_mode = #tpu.pipeline_mode<synchronous>, transform_indices = @transform_1, window_bounds = array<i64: 3, 4, 8>}, {pipeline_mode = #tpu.pipeline_mode<synchronous>, transform_indices = @transform_2, window_bounds = array<i64: 1, 8>}, {transform_indices = @transform_3, window_bounds = array<i64: 1, 16, 8>}]} {
    %c0 = arith.constant 0 : index
    %c0_0 = arith.constant 0 : index
    %c0_1 = arith.constant 0 : index
    %0 = vector.load %arg1[%c0, %c0_0, %c0_1] : memref<1x18x4xf32, #tpu.memory_space<vmem>>, vector<1x18x4xf32>
    %1 = vector.shape_cast %0 : vector<1x18x4xf32> to vector<18x4xf32>
    %cst = arith.constant 0.000000e+00 : f32
    %2 = vector.broadcast %cst : f32 to vector<16x8xf32>
    %3 = vector.extract_strided_slice %1 {offsets = [0, 0], sizes = [16, 4], strides = [1, 1]} : vector<18x4xf32> to vector<16x4xf32>
    %c0_2 = arith.constant 0 : index
    %c0_3 = arith.constant 0 : index
    %c0_4 = arith.constant 0 : index
    %4 = vector.load %arg2[%c0_2, %c0_3, %c0_4] : memref<3x4x8xf32, #tpu.memory_space<vmem>>, vector<1x4x8xf32>
    %5 = vector.shape_cast %4 : vector<1x4x8xf32> to vector<4x8xf32>
    %cst_5 = arith.constant dense<0.000000e+00> : vector<16x8xf32>
    %6 = tpu.matmul %3, %5, %cst_5 {dimension_numbers = #tpu.dot_dimension_numbers<[1], [0], [0], [1], [0, 0, 1, 1], [], []>} : vector<16x4xf32>, vector<4x8xf32>, vector<16x8xf32> -> vector<16x8xf32>
    %7 = arith.addf %2, %6 : vector<16x8xf32>
    %8 = vector.extract_strided_slice %1 {offsets = [1, 0], sizes = [16, 4], strides = [1, 1]} : vector<18x4xf32> to vector<16x4xf32>
    %c1 = arith.constant 1 : index
    %c0_6 = arith.constant 0 : index
    %c0_7 = arith.constant 0 : index
    %9 = vector.load %arg2[%c1, %c0_6, %c0_7] : memref<3x4x8xf32, #tpu.memory_space<vmem>>, vector<1x4x8xf32>
    %10 = vector.shape_cast %9 : vector<1x4x8xf32> to vector<4x8xf32>
    %cst_8 = arith.constant dense<0.000000e+00> : vector<16x8xf32>
    %11 = tpu.matmul %8, %10, %cst_8 {dimension_numbers = #tpu.dot_dimension_numbers<[1], [0], [0], [1], [0, 0, 1, 1], [], []>} : vector<16x4xf32>, vector<4x8xf32>, vector<16x8xf32> -> vector<16x8xf32>
    %12 = arith.addf %7, %11 : vector<16x8xf32>
    %13 = vector.extract_strided_slice %1 {offsets = [2, 0], sizes = [16, 4], strides = [1, 1]} : vector<18x4xf32> to vector<16x4xf32>
    %c2 = arith.constant 2 : index
    %c0_9 = arith.constant 0 : index
    %c0_10 = arith.constant 0 : index
    %14 = vector.load %arg2[%c2, %c0_9, %c0_10] : memref<3x4x8xf32, #tpu.memory_space<vmem>>, vector<1x4x8xf32>
    %15 = vector.shape_cast %14 : vector<1x4x8xf32> to vector<4x8xf32>
    %cst_11 = arith.constant dense<0.000000e+00> : vector<16x8xf32>
    %16 = tpu.matmul %13, %15, %cst_11 {dimension_numbers = #tpu.dot_dimension_numbers<[1], [0], [0], [1], [0, 0, 1, 1], [], []>} : vector<16x4xf32>, vector<4x8xf32>, vector<16x8xf32> -> vector<16x8xf32>
    %17 = arith.addf %12, %16 : vector<16x8xf32>
    %c0_12 = arith.constant 0 : index
    %c0_13 = arith.constant 0 : index
    %18 = vector.load %arg3[%c0_12, %c0_13] : memref<1x8xf32, #tpu.memory_space<vmem>>, vector<1x8xf32>
    %19 = vector.broadcast %18 : vector<1x8xf32> to vector<16x8xf32>
    %20 = arith.addf %17, %19 : vector<16x8xf32>
    %cst_14 = arith.constant 0.000000e+00 : f32
    %21 = vector.broadcast %cst_14 : f32 to vector<16x8xf32>
    %22 = arith.maximumf %20, %21 : vector<16x8xf32>
    %c0_15 = arith.constant 0 : index
    %c0_16 = arith.constant 0 : index
    %c0_17 = arith.constant 0 : index
    %23 = vector.load %arg4[%c0_15, %c0_16, %c0_17] : memref<1x16x8xf32, #tpu.memory_space<vmem>>, vector<1x16x8xf32>
    %24 = vector.shape_cast %23 : vector<1x16x8xf32> to vector<16x8xf32>
    %25 = vector.shape_cast %22 : vector<16x8xf32> to vector<1x16x8xf32>
    tpu.vector_store %arg4[%c0_15, %c0_16, %c0_17], %25 {strides = array<i32>} : memref<1x16x8xf32, #tpu.memory_space<vmem>>, vector<1x16x8xf32>,
    return
  }
  func.func @transform_0(%arg0: i32) -> (i32, i32, i32) {
    %c0_i32 = arith.constant 0 : i32
    %c0_i32_0 = arith.constant 0 : i32
    %c0_i32_1 = arith.constant 0 : i32
    return %arg0, %c0_i32, %c0_i32_0 : i32, i32, i32
  }
  func.func @transform_1(%arg0: i32) -> (i32, i32, i32) {
    %c0_i32 = arith.constant 0 : i32
    %c0_i32_0 = arith.constant 0 : i32
    %c0_i32_1 = arith.constant 0 : i32
    %c0_i32_2 = arith.constant 0 : i32
    return %c0_i32, %c0_i32_0, %c0_i32_1 : i32, i32, i32
  }
  func.func @transform_2(%arg0: i32) -> (i32, i32) {
    %c0_i32 = arith.constant 0 : i32
    %c0_i32_0 = arith.constant 0 : i32
    %c0_i32_1 = arith.constant 0 : i32
    return %c0_i32, %c0_i32_0 : i32, i32
  }
  func.func @transform_3(%arg0: i32) -> (i32, i32, i32) {
    %c0_i32 = arith.constant 0 : i32
    %c0_i32_0 = arith.constant 0 : i32
    %c0_i32_1 = arith.constant 0 : i32
    return %arg0, %c0_i32, %c0_i32_0 : i32, i32, i32
  }
}

</mosaic_0001>

<bundles_post_ra>
// kernel: tpu_custom_call.1
= control target key start
LH: loop header
LB: loop body
LE: loop exit
PB: predicated region body
PF: predicated region fallthrough
CT: control target
= control target key end

     0   :  { %s601_s12 = smov 0   ;;  %s646_s0 = inlined_call_operand.vmem [shape: f32[2,18,4], index: 0, kind: input, shape index: {}]   ;;  %s647_s1 = inlined_call_operand.vmem [shape: f32[3,4,8], index: 1, kind: input, shape index: {}]   ;;  %s648_s2 = inlined_call_operand.vmem [shape: f32[1,8], index: 2, kind: input, shape index: {}]   ;;  %s649_s3 = inlined_call_operand.vmem [shape: f32[2,16,8], index: 3, kind: output, shape index: {}]  }
   0x1 LB: > { %s513_s13 = sadd.s32 4294967295, %s579_s12   ;;  %p517_p0 = scmp.ge.s32.totalorder %s579_s12, 1  ;;  %s579_s12 = sphi %s601_s12, %s13_s12  }
   0x2   : > { %p137_p1 = scmp.lt.s32.totalorder %s579_s12, 3 }
   0x4   : > { %p138_p2 = pnand %p517_p0, %p137_p1 }
   0x5   : > { %v174_v0 = vld [vmem:[%s647_s1] sm:$0xf] (!%p138_p2)  ;;  %vm191_vm0 = vcmask (!%p138_p2), 1043456   ;;  %p161_p3 = scmp.lt.s32.totalorder (!%p138_p2), %s513_s13, 1  ;;  %v528_v1 = vld [vmem:[%s647_s1 + $0x8] sm:$0xf] (!%p138_p2) }
   0x6   : > { %141 = sbr.rel (%p138_p2) target bundleno = 247 (0xf7), region = 32  ;;  %550 = vmatprep.subr.msk.mxu0 (!%p138_p2), %vm191_vm0, %v174_v0  ;;  %v521_v2 = vld [vmem:[%s647_s1 + $0x4] sm:$0xf] (!%p138_p2)  ;;  %vm186_vm1 = vcmask (!%p138_p2), 31744   ;;  %vm180_vm2 = vcmask (!%p138_p2), 1046528   ;;  %vm354_vm3 = vcmask (!%p138_p2), 1045504  }
   0x7   : > { %551 = vmatpush3.msk.msra.mxu0 (!%p138_p2), %vm191_vm0, %v174_v0  ;;  %545 = vmatprep.subr.msk.mxu1 (!%p138_p2), %vm191_vm0, %v521_v2  ;;  %v532_v19 = vld [vmem:[%s648_s2] ss:$0 sm:$0xff] (!%p138_p2)  ;;  %vm455_vm4 = vcmask (!%p138_p2), 64512  }
   0x8   : > { %555 = vmatprep.subr.msk.mxu0 (!%p138_p2), %vm191_vm0, %v528_v1  ;;  %546 = vmatpush3.msk.msra.mxu1 (!%p138_p2), %vm191_vm0, %v521_v2 }
   0xd   : > { %s651_s13 = smov (!%p161_p3, %s513_s13), 1 }
   0xe   : > { %s564_s20 = smul.u32 24, %s651_s13  ;;  %s535_s26 = sshll.u32 %s651_s13, 4 }
   0xf   : > { %s170_s29 = scalar_lea.vmem %s649_s3, %s535_s26 }
  0x10   : > { %s165_s23 = scalar_lea.vmem %s646_s0, %s564_s20 }
  0x11   : > { %v171_v3 = vld [vmem:[%s165_s23] sm:$0xff]  ;;  %v173_v4 = vld [vmem:[%s165_s23 + $0x10] sm:$0x3]  ;;  %v172_v5 = vld [vmem:[%s165_s23 + $0x8] sm:$0xff] }
  0x12   : > { %v181_v6 = vrot.slane %v171_v3, 1  ;;  %v184_v7 = vrot.slane %v173_v4, 1  ;;  %552 = vmatprep.mubr.msk.f32.mxu0 %vm186_vm1, %v171_v3  ;;  %v355_v8 = vrot.slane %v171_v3, 2  ;;  %v356_v9 = vrot.slane %v172_v5, 2 }
  0x13   : > { %553 = vmatmul.mubr.msk.f32.vlgmr.msra.gmra.mrb[0].mxu0 %vm186_vm1, %v172_v5  ;;  %v182_v10 = vrot.slane %v172_v5, 1  ;;  %v358_v11 = vrot.slane %v173_v4, 2 }
  0x14   : > { %556 = vmatpush3.msk.msra.mxu0 %vm191_vm0, %v528_v1  ;;  %v357_v14 = vsel %vm354_vm3, %v355_v8, %v356_v9 }
  0x15   : > { %v183_v12 = vsel %vm180_vm2, %v181_v6, %v182_v10  ;;  %v185_v13 = vsel %vm180_vm2, %v182_v10, %v184_v7  ;;  %557 = vmatprep.mubr.msk.f32.mxu0 %vm186_vm1, %v357_v14  ;;  %v359_v15 = vsel %vm354_vm3, %v356_v9, %v358_v11 }
  0x16   : > { %547 = vmatprep.mubr.msk.f32.mxu1 %vm186_vm1, %v183_v12 }
  0x17   : > { %548 = vmatmul.mubr.msk.f32.vlgmr.msra.gmra.mrb[0].mxu1 %vm186_vm1, %v185_v13 }
  0x1b   : > { %558 = vmatmul.mubr.msk.f32.vlgmr.msra.gmra.mrb[0].mxu0 %vm186_vm1, %v359_v15 }
  0xea   : > { %v549_v16 = vpop.f32.mrb[0].mxu1 }
  0xeb   : > { %v261_v17 = vpop.f32.mrb[1].mxu1 }
  0xee   : > { %v559_v18 = vpop.f32.mrb[0].mxu0 }
  0xef   : > { %v560_v20 = vadd.f32 %v559_v18, %v549_v16  ;;  %v433_v21 = vpop.f32.mrb[1].mxu0 }
  0xf0   : > { %v561_v22 = vadd.f32 %v433_v21, %v261_v17 }
  0xf1   : > { %v452_v23 = vadd.f32 %v560_v20, %v532_v19 }
  0xf2   : > { %v451_v24 = vadd.f32 %v561_v22, %v532_v19 }
  0xf3   : > { %v454_v25 = vmax.f32 %v452_v23, 0.0 }
  0xf4   : > { %v453_v26 = vmax.f32 %v451_v24, 0.0 }
  0xf5   : > { %457 = vst.msk [vmem:[%s170_s29 + $0x8] sm:$0xff] %vm455_vm4, %v454_v25 }
  0xf6   : > { %456 = vst.msk [vmem:[%s170_s29] sm:$0xff] %vm455_vm4, %v453_v26 }
  0xf7 PF: > { %s13_s12 = sadd.s32 1, %s579_s12  }
  0xf8   : > { %p10_p4 = scmp.ge.s32.totalorder %s13_s12, 4  }
  0xfa   :  { %12 = sbr.rel (!%p10_p4) target bundleno = 1 (0x1), region = 64 }

</bundles_post_ra>
